<compile_context>
chip_gen: v7x
topology: tpu7x:2x2x1
jax: 0.10.0
libtpu: 0.0.40
codegen_flags: <defaults>
</compile_context>

<pallas_src>
import functools

import jax
import jax.numpy as jnp
from jax import lax
from jax.experimental import pallas as pl
from jax.experimental.pallas import tpu as pltpu

block_size = 8                      # T
n_embd = 32                         # C
n_head = 4
head_size = n_embd // n_head        # 8  (see NOTE above)
H = n_head * head_size              # 32


def mha_kernel(x_ref, wmain_ref, wk_ref, bp_ref, o_ref, *, seq_len):
    """Single invocation: all batches, all heads.

    x_ref     : (B*T, C)              flattened tokens
    wmain_ref : (C, n_head*C + H)     [Wvp (value+output-proj fused, per head) | Wq^T * C**-0.5]
    wk_ref    : (C, H)                Wk^T
    bp_ref    : (1, C)                output-projection bias
    o_ref     : (B*T, C)
    """
    x = x_ref[...]                                        # (B*T, C)
    BT, C = x.shape
    T = seq_len

    # Fused [Wvp | Wq*scale] projection: one MXU pass; vproj occupies lanes [0,128)
    # (tile-aligned) and q occupies lanes [128, 160) (starts on a lane-tile boundary).
    y = jnp.dot(x, wmain_ref[...], preferred_element_type=jnp.float32)   # (BT, n_head*C + H)
    vproj = y[:, :n_head * C]                             # (BT, n_head*C) — already output-projected
    q = y[:, n_head * C:]                                 # (BT, H), scale folded into the weight
    # K from its own weight: avoids the lane-offset-32 slice a fused [..|Wq|Wk] would need.
    k = jnp.dot(x, wk_ref[...], preferred_element_type=jnp.float32)      # (BT, H)

    # Block-diagonal causal additive bias, generated in-kernel (no extra DMA):
    # entry (r, c) allowed iff same batch block and c <= r.
    row = lax.broadcasted_iota(jnp.int32, (BT, BT), 0)
    col = lax.broadcasted_iota(jnp.int32, (BT, BT), 1)
    if T & (T - 1) == 0:
        same_batch = (row ^ col) < T                      # power-of-two T: cheap bitwise form
    else:
        same_batch = (row // T) == (col // T)
    allowed = jnp.logical_and(same_batch, col <= row)
    bias = jnp.where(allowed, 0.0, -1e30)                 # finite negative: NaN-safe, cheap

    bp = bp_ref[...]                                      # (1, C)

    acc = None
    for h in range(n_head):                               # n_head = 4: tiny static unroll
        c0 = h * head_size
        q_h = q[:, c0:c0 + head_size]                     # (BT, hs)
        k_h = k[:, c0:c0 + head_size]                     # (BT, hs)
        # q @ k^T without materializing a transpose (contract last dims).
        s = lax.dot_general(q_h, k_h, (((1,), (1,)), ((), ())),
                            preferred_element_type=jnp.float32)           # (BT, BT)
        s = s + bias                                      # block-diagonal causal mask
        s = s - jnp.max(s, axis=-1, keepdims=True)        # stable softmax
        p = jnp.exp(s)
        p = p * pl.reciprocal(jnp.sum(p, axis=-1, keepdims=True), approx=True)
        v_h = vproj[:, h * C:(h + 1) * C]                 # (BT, C) — value + output proj fused
        contrib = jnp.dot(p, v_h, preferred_element_type=jnp.float32)     # (BT, C)
        acc = contrib if acc is None else acc + contrib

    # Single contiguous, lane/sublane-aligned store.
    o_ref[...] = (acc + bp).astype(o_ref.dtype)


def pack_mha_weights(wq, wk, wv, wp):
    """One-time weight packing (layout plumbing). Callers should cache the result:
    these XLA ops cost more than the whole kernel at this size."""
    C = n_embd
    scale = C ** (-0.5)  # NB: the PyTorch code scales by C**-0.5 (n_embd), not head_size.

    w_q_t = wq.reshape(H, C).T * scale                    # (C, H), scale folded in
    w_k_t = jnp.asarray(wk.reshape(H, C).T, jnp.float32)  # (C, H)

    # Per-head fused value + output-projection weight:
    #   Wvp[h] = Wv[h]^T @ Wproj[:, h*hs:(h+1)*hs]^T  -> (C, C)
    wp_r = wp.reshape(C, n_head, head_size)               # (E, h, d)
    wvp = jnp.einsum('hdc,ehd->hce', wv, wp_r)            # (h, C, E)
    w_vp = jnp.transpose(wvp, (1, 0, 2)).reshape(C, n_head * C)           # (C, n_head*E)

    # Pack the 128-lane-wide Wvp block first (lane-tile aligned), then Wq.
    w_main = jnp.concatenate([w_vp, w_q_t], axis=1)       # (C, n_head*E + H)
    return w_main, w_k_t


def multi_head_attention(x, w_main, w_k_t, bp):
    B, T, C = x.shape
    x_flat = x.reshape(B * T, C)

    vmem = lambda: pl.BlockSpec(memory_space=pltpu.MemorySpace.VMEM)
    # Toy B: collapsed single invocation (single-TC v5e/v6e: no per-grid-step overhead).
    # TODO(synk): for v7x / large B, add a grid over row tiles of B*T with
    # dimension_semantics=("parallel",) and row-tiled BlockSpecs (64 MiB VMEM budget).
    out_flat = pl.pallas_call(
        functools.partial(mha_kernel, seq_len=T),
        out_shape=jax.ShapeDtypeStruct((B * T, C), x.dtype),
        in_specs=[vmem() for _ in range(4)],
        out_specs=vmem(),
    )(x_flat, w_main, w_k_t, bp)
    return out_flat.reshape(B, T, C)


def reference(x, wq, wk, wv, wp, bp, tril):
    """Pure-JAX reference mirroring the PyTorch forward exactly."""
    B, T, C = x.shape
    outs = []
    for h in range(n_head):
        q = x @ wq[h].T
        k = x @ wk[h].T
        v = x @ wv[h].T
        wei = (q @ jnp.swapaxes(k, -1, -2)) * C ** (-0.5)
        wei = jnp.where(tril[:T, :T] == 0.0, -jnp.inf, wei)
        wei = jax.nn.softmax(wei, axis=-1)
        outs.append(wei @ v)
    cat = jnp.concatenate(outs, axis=-1)
    return cat @ wp.T + bp[0]


if __name__ == "__main__":
    key = jax.random.PRNGKey(0)
    kx, kq, kk, kv, kp, kb = jax.random.split(key, 6)

    B, T, C = 2, block_size, n_embd
    x = jax.random.normal(kx, (B, T, C), dtype=jnp.float32)

    # Deterministic parameter init (PyTorch Linear-style uniform bounds).
    bound_head = 1.0 / (n_embd ** 0.5)
    wq = jax.random.uniform(kq, (n_head, head_size, n_embd), jnp.float32, -bound_head, bound_head)
    wk = jax.random.uniform(kk, (n_head, head_size, n_embd), jnp.float32, -bound_head, bound_head)
    wv = jax.random.uniform(kv, (n_head, head_size, n_embd), jnp.float32, -bound_head, bound_head)

    bound_proj = 1.0 / ((n_head * head_size) ** 0.5)
    wp = jax.random.uniform(kp, (n_embd, n_head * head_size), jnp.float32, -bound_proj, bound_proj)
    bp = jax.random.uniform(kb, (1, n_embd), jnp.float32, -bound_proj, bound_proj)

    tril = jnp.tril(jnp.ones((block_size, block_size), dtype=jnp.float32))

    # Pack once and reuse (caller-side cache).
    w_main, w_k_t = pack_mha_weights(wq, wk, wv, wp)
    w_main = jax.block_until_ready(w_main)
    w_k_t = jax.block_until_ready(w_k_t)

    out = multi_head_attention(x, w_main, w_k_t, bp)
    out = jax.block_until_ready(out)

    ref = reference(x, wq, wk, wv, wp, bp, tril)
    assert out.shape == (B, T, n_embd)
    # Tolerance accounts for the EUP approximate reciprocal in the softmax normalization
    # and the (algebraically exact) re-association of the value/output projections.
    assert jnp.allclose(out, ref, atol=2e-3, rtol=2e-3), float(jnp.max(jnp.abs(out - ref)))

    print("KERNEL_OK")
</pallas_src>

<mosaic_0001>
module attributes {stable_mosaic.version = 11 : i64} {
  func.func @mha_kernel(%arg0: memref<16x32xf32, #tpu.memory_space<vmem>>, %arg1: memref<32x160xf32, #tpu.memory_space<vmem>>, %arg2: memref<32x32xf32, #tpu.memory_space<vmem>>, %arg3: memref<1x32xf32, #tpu.memory_space<vmem>>, %arg4: memref<16x32xf32, #tpu.memory_space<vmem>>) attributes {dimension_semantics = [], scalar_prefetch = 0 : i64, scratch_operands = 0 : i64, tpu.core_type = #tpu.core_type<tc>} {
    %c0 = arith.constant 0 : index
    %c0_0 = arith.constant 0 : index
    %0 = vector.load %arg0[%c0, %c0_0] : memref<16x32xf32, #tpu.memory_space<vmem>>, vector<16x32xf32>
    %c0_1 = arith.constant 0 : index
    %c0_2 = arith.constant 0 : index
    %1 = vector.load %arg1[%c0_1, %c0_2] : memref<32x160xf32, #tpu.memory_space<vmem>>, vector<32x160xf32>
    %cst = arith.constant dense<0.000000e+00> : vector<16x160xf32>
    %2 = tpu.matmul %0, %1, %cst {dimension_numbers = #tpu.dot_dimension_numbers<[1], [0], [0], [1], [0, 0, 1, 1], [], []>} : vector<16x32xf32>, vector<32x160xf32>, vector<16x160xf32> -> vector<16x160xf32>
    %3 = vector.extract_strided_slice %2 {offsets = [0, 0], sizes = [16, 128], strides = [1, 1]} : vector<16x160xf32> to vector<16x128xf32>
    %4 = vector.extract_strided_slice %2 {offsets = [0, 128], sizes = [16, 32], strides = [1, 1]} : vector<16x160xf32> to vector<16x32xf32>
    %c0_3 = arith.constant 0 : index
    %c0_4 = arith.constant 0 : index
    %5 = vector.load %arg2[%c0_3, %c0_4] : memref<32x32xf32, #tpu.memory_space<vmem>>, vector<32x32xf32>
    %cst_5 = arith.constant dense<0.000000e+00> : vector<16x32xf32>
    %6 = tpu.matmul %0, %5, %cst_5 {dimension_numbers = #tpu.dot_dimension_numbers<[1], [0], [0], [1], [0, 0, 1, 1], [], []>} : vector<16x32xf32>, vector<32x32xf32>, vector<16x32xf32> -> vector<16x32xf32>
    %7 = tpu.iota {dimensions = array<i32: 0>} : vector<16x16xi32>
    %8 = tpu.iota {dimensions = array<i32: 1>} : vector<16x16xi32>
    %9 = arith.xori %7, %8 : vector<16x16xi32>
    %c8_i32 = arith.constant 8 : i32
    %10 = vector.broadcast %c8_i32 : i32 to vector<16x16xi32>
    %11 = arith.cmpi slt, %9, %10 : vector<16x16xi32>
    %12 = arith.cmpi sle, %8, %7 : vector<16x16xi32>
    %13 = arith.andi %11, %12 : vector<16x16xi1>
    %cst_6 = arith.constant 0.000000e+00 : f32
    %cst_7 = arith.constant -1.000000e+30 : f32
    %14 = vector.broadcast %cst_6 : f32 to vector<16x16xf32>
    %15 = vector.broadcast %cst_7 : f32 to vector<16x16xf32>
    %16 = arith.select %13, %14, %15 : vector<16x16xi1>, vector<16x16xf32>
    %c0_8 = arith.constant 0 : index
    %c0_9 = arith.constant 0 : index
    %17 = vector.load %arg3[%c0_8, %c0_9] : memref<1x32xf32, #tpu.memory_space<vmem>>, vector<1x32xf32>
    %18 = vector.extract_strided_slice %4 {offsets = [0, 0], sizes = [16, 8], strides = [1, 1]} : vector<16x32xf32> to vector<16x8xf32>
    %19 = vector.extract_strided_slice %6 {offsets = [0, 0], sizes = [16, 8], strides = [1, 1]} : vector<16x32xf32> to vector<16x8xf32>
    %cst_10 = arith.constant dense<0.000000e+00> : vector<16x16xf32>
    %20 = tpu.matmul %18, %19, %cst_10 {dimension_numbers = #tpu.dot_dimension_numbers<[1], [1], [0], [0], [0, 0, 1, 0], [], []>} : vector<16x8xf32>, vector<16x8xf32>, vector<16x16xf32> -> vector<16x16xf32>
    %21 = arith.addf %20, %16 : vector<16x16xf32>
    %cst_11 = arith.constant dense<0xFF800000> : vector<16xf32>
    %22 = vector.multi_reduction <maximumf>, %21, %cst_11 [1] : vector<16x16xf32> to vector<16xf32>
    %23 = vector.shape_cast %22 : vector<16xf32> to vector<16x1xf32>
    %24 = vector.broadcast %23 : vector<16x1xf32> to vector<16x16xf32>
    %25 = arith.subf %21, %24 : vector<16x16xf32>
    %26 = math.exp %25 : vector<16x16xf32>
    %cst_12 = arith.constant dense<0.000000e+00> : vector<16xf32>
    %27 = vector.multi_reduction <add>, %26, %cst_12 [1] : vector<16x16xf32> to vector<16xf32>
    %28 = vector.shape_cast %27 : vector<16xf32> to vector<16x1xf32>
    %29 = tpu.reciprocal %28 {approx = true} : vector<16x1xf32> -> vector<16x1xf32>
    %30 = vector.broadcast %29 : vector<16x1xf32> to vector<16x16xf32>
    %31 = arith.mulf %26, %30 : vector<16x16xf32>
    %32 = vector.extract_strided_slice %3 {offsets = [0, 0], sizes = [16, 32], strides = [1, 1]} : vector<16x128xf32> to vector<16x32xf32>
    %cst_13 = arith.constant dense<0.000000e+00> : vector<16x32xf32>
    %33 = tpu.matmul %31, %32, %cst_13 {dimension_numbers = #tpu.dot_dimension_numbers<[1], [0], [0], [1], [0, 0, 1, 1], [], []>} : vector<16x16xf32>, vector<16x32xf32>, vector<16x32xf32> -> vector<16x32xf32>
    %34 = vector.extract_strided_slice %4 {offsets = [0, 8], sizes = [16, 8], strides = [1, 1]} : vector<16x32xf32> to vector<16x8xf32>
    %35 = vector.extract_strided_slice %6 {offsets = [0, 8], sizes = [16, 8], strides = [1, 1]} : vector<16x32xf32> to vector<16x8xf32>
    %cst_14 = arith.constant dense<0.000000e+00> : vector<16x16xf32>
    %36 = tpu.matmul %34, %35, %cst_14 {dimension_numbers = #tpu.dot_dimension_numbers<[1], [1], [0], [0], [0, 0, 1, 0], [], []>} : vector<16x8xf32>, vector<16x8xf32>, vector<16x16xf32> -> vector<16x16xf32>
    %37 = arith.addf %36, %16 : vector<16x16xf32>
    %cst_15 = arith.constant dense<0xFF800000> : vector<16xf32>
    %38 = vector.multi_reduction <maximumf>, %37, %cst_15 [1] : vector<16x16xf32> to vector<16xf32>
    %39 = vector.shape_cast %38 : vector<16xf32> to vector<16x1xf32>
    %40 = vector.broadcast %39 : vector<16x1xf32> to vector<16x16xf32>
    %41 = arith.subf %37, %40 : vector<16x16xf32>
    %42 = math.exp %41 : vector<16x16xf32>
    %cst_16 = arith.constant dense<0.000000e+00> : vector<16xf32>
    %43 = vector.multi_reduction <add>, %42, %cst_16 [1] : vector<16x16xf32> to vector<16xf32>
    %44 = vector.shape_cast %43 : vector<16xf32> to vector<16x1xf32>
    %45 = tpu.reciprocal %44 {approx = true} : vector<16x1xf32> -> vector<16x1xf32>
    %46 = vector.broadcast %45 : vector<16x1xf32> to vector<16x16xf32>
    %47 = arith.mulf %42, %46 : vector<16x16xf32>
    %48 = vector.extract_strided_slice %3 {offsets = [0, 32], sizes = [16, 32], strides = [1, 1]} : vector<16x128xf32> to vector<16x32xf32>
    %cst_17 = arith.constant dense<0.000000e+00> : vector<16x32xf32>
    %49 = tpu.matmul %47, %48, %cst_17 {dimension_numbers = #tpu.dot_dimension_numbers<[1], [0], [0], [1], [0, 0, 1, 1], [], []>} : vector<16x16xf32>, vector<16x32xf32>, vector<16x32xf32> -> vector<16x32xf32>
    %50 = arith.addf %33, %49 : vector<16x32xf32>
    %51 = vector.extract_strided_slice %4 {offsets = [0, 16], sizes = [16, 8], strides = [1, 1]} : vector<16x32xf32> to vector<16x8xf32>
    %52 = vector.extract_strided_slice %6 {offsets = [0, 16], sizes = [16, 8], strides = [1, 1]} : vector<16x32xf32> to vector<16x8xf32>
    %cst_18 = arith.constant dense<0.000000e+00> : vector<16x16xf32>
    %53 = tpu.matmul %51, %52, %cst_18 {dimension_numbers = #tpu.dot_dimension_numbers<[1], [1], [0], [0], [0, 0, 1, 0], [], []>} : vector<16x8xf32>, vector<16x8xf32>, vector<16x16xf32> -> vector<16x16xf32>
    %54 = arith.addf %53, %16 : vector<16x16xf32>
    %cst_19 = arith.constant dense<0xFF800000> : vector<16xf32>
    %55 = vector.multi_reduction <maximumf>, %54, %cst_19 [1] : vector<16x16xf32> to vector<16xf32>
    %56 = vector.shape_cast %55 : vector<16xf32> to vector<16x1xf32>
    %57 = vector.broadcast %56 : vector<16x1xf32> to vector<16x16xf32>
    %58 = arith.subf %54, %57 : vector<16x16xf32>
    %59 = math.exp %58 : vector<16x16xf32>
    %cst_20 = arith.constant dense<0.000000e+00> : vector<16xf32>
    %60 = vector.multi_reduction <add>, %59, %cst_20 [1] : vector<16x16xf32> to vector<16xf32>
    %61 = vector.shape_cast %60 : vector<16xf32> to vector<16x1xf32>
    %62 = tpu.reciprocal %61 {approx = true} : vector<16x1xf32> -> vector<16x1xf32>
    %63 = vector.broadcast %62 : vector<16x1xf32> to vector<16x16xf32>
    %64 = arith.mulf %59, %63 : vector<16x16xf32>
    %65 = vector.extract_strided_slice %3 {offsets = [0, 64], sizes = [16, 32], strides = [1, 1]} : vector<16x128xf32> to vector<16x32xf32>
    %cst_21 = arith.constant dense<0.000000e+00> : vector<16x32xf32>
    %66 = tpu.matmul %64, %65, %cst_21 {dimension_numbers = #tpu.dot_dimension_numbers<[1], [0], [0], [1], [0, 0, 1, 1], [], []>} : vector<16x16xf32>, vector<16x32xf32>, vector<16x32xf32> -> vector<16x32xf32>
    %67 = arith.addf %50, %66 : vector<16x32xf32>
    %68 = vector.extract_strided_slice %4 {offsets = [0, 24], sizes = [16, 8], strides = [1, 1]} : vector<16x32xf32> to vector<16x8xf32>
    %69 = vector.extract_strided_slice %6 {offsets = [0, 24], sizes = [16, 8], strides = [1, 1]} : vector<16x32xf32> to vector<16x8xf32>
    %cst_22 = arith.constant dense<0.000000e+00> : vector<16x16xf32>
    %70 = tpu.matmul %68, %69, %cst_22 {dimension_numbers = #tpu.dot_dimension_numbers<[1], [1], [0], [0], [0, 0, 1, 0], [], []>} : vector<16x8xf32>, vector<16x8xf32>, vector<16x16xf32> -> vector<16x16xf32>
    %71 = arith.addf %70, %16 : vector<16x16xf32>
    %cst_23 = arith.constant dense<0xFF800000> : vector<16xf32>
    %72 = vector.multi_reduction <maximumf>, %71, %cst_23 [1] : vector<16x16xf32> to vector<16xf32>
    %73 = vector.shape_cast %72 : vector<16xf32> to vector<16x1xf32>
    %74 = vector.broadcast %73 : vector<16x1xf32> to vector<16x16xf32>
    %75 = arith.subf %71, %74 : vector<16x16xf32>
    %76 = math.exp %75 : vector<16x16xf32>
    %cst_24 = arith.constant dense<0.000000e+00> : vector<16xf32>
    %77 = vector.multi_reduction <add>, %76, %cst_24 [1] : vector<16x16xf32> to vector<16xf32>
    %78 = vector.shape_cast %77 : vector<16xf32> to vector<16x1xf32>
    %79 = tpu.reciprocal %78 {approx = true} : vector<16x1xf32> -> vector<16x1xf32>
    %80 = vector.broadcast %79 : vector<16x1xf32> to vector<16x16xf32>
    %81 = arith.mulf %76, %80 : vector<16x16xf32>
    %82 = vector.extract_strided_slice %3 {offsets = [0, 96], sizes = [16, 32], strides = [1, 1]} : vector<16x128xf32> to vector<16x32xf32>
    %cst_25 = arith.constant dense<0.000000e+00> : vector<16x32xf32>
    %83 = tpu.matmul %81, %82, %cst_25 {dimension_numbers = #tpu.dot_dimension_numbers<[1], [0], [0], [1], [0, 0, 1, 1], [], []>} : vector<16x16xf32>, vector<16x32xf32>, vector<16x32xf32> -> vector<16x32xf32>
    %84 = arith.addf %67, %83 : vector<16x32xf32>
    %85 = vector.broadcast %17 : vector<1x32xf32> to vector<16x32xf32>
    %86 = arith.addf %84, %85 : vector<16x32xf32>
    %c0_26 = arith.constant 0 : index
    %c0_27 = arith.constant 0 : index
    %87 = vector.load %arg4[%c0_26, %c0_27] : memref<16x32xf32, #tpu.memory_space<vmem>>, vector<16x32xf32>
    tpu.vector_store %arg4[%c0_26, %c0_27], %86 {strides = array<i32>} : memref<16x32xf32, #tpu.memory_space<vmem>>, vector<16x32xf32>,
    return
  }
}

</mosaic_0001>

<bundles_post_ra>
// kernel: tpu_custom_call.1
= control target key start
LH: loop header
LB: loop body
LE: loop exit
PB: predicated region body
PF: predicated region fallthrough
CT: control target
= control target key end

     0   :  { %9 = vsyncpa [#allocation3], 0  ;;  %s1632_s0 = inlined_call_operand.hbm [shape: f32[16,32], index: 0, kind: input, shape index: {}]   ;;  %s1633_s1 = inlined_call_operand.hbm [shape: f32[32,160], index: 1, kind: input, shape index: {}]   ;;  %s1634_s2 = inlined_call_operand.hbm [shape: f32[32,32], index: 2, kind: input, shape index: {}]   ;;  %s1635_s3 = inlined_call_operand.vmem [shape: f32[1,32], index: 3, kind: input, shape index: {}]   ;;  %s1636_s4 = inlined_call_operand.hbm [shape: f32[16,32], index: 4, kind: output, shape index: {}]  }
   0x1   :  { %10 = vsyncpa [#allocation6], 0 }
   0x2   :  { %11 = vsyncpa [#allocation4], 0  ;;  %s1442_s15 = smov [#allocation5]   ;;  %s1348_s19 = scalar_lea.hbm %s1633_s1, 1024 }
   0x3   :  { %s29_s16 = sshll.u32 %s1442_s15, 4  ;;  %p1349_p0 = scmp.ne.s32.totalorder %s1633_s1, %s1348_s19  ;;  %s30_s16 = int_to_ptr.vmem [resolvable:$true] %s29_s16 }
   0x4   :  { %p1352_p1 = scmp.lt.u32.totalorder %s1348_s19, %s1633_s1 }
   0x6   :  { %p1354_p2 = pnand %p1352_p1, %p1349_p0 }
   0x8   :  { %1357 = shalt.err (!%p1354_p2)
}
   0x9   :  { %s1358_s24 = scalar_lea.vmem %s30_s16, 1024  ;;  %p1363_p4 = scmp.lt.s32.totalorder %s30_s16, %s30_s16 }
   0xa   :  { %p1359_p3 = scmp.ne.s32.totalorder %s30_s16, %s1358_s24  ;;  %p1364_p5 = scmp.lt.s32.totalorder %s1358_s24, %s1358_s24 }
   0xc   :  { %p1365_p6 = por %p1364_p5, %p1363_p4 }
   0xe   :  { %p1366_p7 = pnand %p1365_p6, %p1359_p3 }
  0x10   :  { %1369 = shalt.err (!%p1366_p7)
}
  0x11   :  { %s1443_s25 = smov 256   ;;  %s1444_s26 = smov 16  }
  0x12   :  { %35 = dma.hbm_to_vmem [thread:$0]  %s1633_s1, 1024, %s30_s16, [#allocation6], %s1443_s25, %s1443_s25, %s1444_s26  }
  0x13   :  { %s1445_s29 = smov [#allocation2]   ;;  %s1370_s7 = scalar_lea.hbm %s1632_s0, 256 }
  0x14   :  { %s17_s30 = sshll.u32 %s1445_s29, 4  ;;  %p1371_p8 = scmp.ne.s32.totalorder %s1632_s0, %s1370_s7  ;;  %s18_s30 = int_to_ptr.vmem [resolvable:$true] %s17_s30 }
  0x15   :  { %p1374_p9 = scmp.lt.u32.totalorder %s1370_s7, %s1632_s0 }
  0x17   :  { %p1376_p10 = pnand %p1374_p9, %p1371_p8 }
  0x19   :  { %1379 = shalt.err (!%p1376_p10)
}
  0x1a   :  { %s1380_s12 = scalar_lea.vmem %s18_s30, 256  ;;  %p1385_p12 = scmp.lt.s32.totalorder %s18_s30, %s18_s30 }
  0x1b   :  { %p1381_p11 = scmp.ne.s32.totalorder %s18_s30, %s1380_s12  ;;  %p1386_p13 = scmp.lt.s32.totalorder %s1380_s12, %s1380_s12 }
  0x1d   :  { %p1387_p0 = por %p1386_p13, %p1385_p12 }
  0x1f   :  { %p1388_p1 = pnand %p1387_p0, %p1381_p11 }
  0x21   :  { %1391 = shalt.err (!%p1388_p1)
}
  0x22   :  { %s1446_s1 = smov 128   ;;  %s1447_s13 = smov 8  }
  0x23   :  { %23 = dma.hbm_to_vmem [thread:$0]  %s1632_s0, 256, %s18_s30, [#allocation3], %s1446_s1, %s1446_s1, %s1447_s13  }
  0x24   :  { %s1448_s16 = smov [#allocation7]   ;;  %s1392_s20 = scalar_lea.hbm %s1634_s2, 512 }
  0x25   :  { %s41_s17 = sshll.u32 %s1448_s16, 4  ;;  %p1393_p2 = scmp.ne.s32.totalorder %s1634_s2, %s1392_s20  ;;  %s42_s17 = int_to_ptr.vmem [resolvable:$true] %s41_s17 }
  0x26   :  { %p1396_p3 = scmp.lt.u32.totalorder %s1392_s20, %s1634_s2 }
  0x28   :  { %p1398_p4 = pnand %p1396_p3, %p1393_p2 }
  0x2a   :  { %1401 = shalt.err (!%p1398_p4)
}
  0x2b   :  { %s1402_s25 = scalar_lea.vmem %s42_s17, 512  ;;  %p1407_p6 = scmp.lt.s32.totalorder %s42_s17, %s42_s17 }
  0x2c   :  { %p1403_p5 = scmp.ne.s32.totalorder %s42_s17, %s1402_s25  ;;  %p1408_p7 = scmp.lt.s32.totalorder %s1402_s25, %s1402_s25 }
  0x2e   :  { %p1409_p8 = por %p1408_p7, %p1407_p6 }
  0x30   :  { %p1410_p9 = pnand %p1409_p8, %p1403_p5 }
  0x32   :  { %1413 = shalt.err (!%p1410_p9)
}
  0x33   :  { %47 = dma.hbm_to_vmem [thread:$0]  %s1634_s2, 512, %s42_s17, [#allocation6], %s1446_s1, %s1446_s1, %s1447_s13  }
  0x34   :  { %1436 = dma.done.wait [#allocation3], 256  }
  0x35   :  { %1437 = vsyncadd [#allocation3], 4294967040 }
  0x36   :  { %1438 = dma.done.wait [#allocation6], 1536  }
  0x37   :  { %1439 = vsyncadd [#allocation6], 4294965760  ;;  %v1449_v0 = vmov 0.0   ;;  %v62_v1 = vld [vmem:[#allocation5 + $0x8] sm:$0xff]  ;;  %v64_v2 = vld [vmem:[#allocation5 + $0x18] sm:$0xff]  ;;  %vm69_vm0 = vcmask 261120   ;;  %v232_v52 = vlaneseq }
  0x38   :  { %140 = vmatprep.mubr.f32.mxu0 %v1449_v0  ;;  %v153_v3 = vld [vmem:[#allocation7] sm:$0xff]  ;;  %v1208_v4 = vpack.c.bf16 %v64_v2, %v62_v1  ;;  %v154_v5 = vld [vmem:[#allocation7 + $0x8] sm:$0xff]  ;;  %v63_v7 = vld [vmem:[#allocation5 + $0x10] sm:$0xff]  ;;  %vm248_vm1 = vcmask 64512   ;;  %s1450_s2 = smov 120   ;;  %s1451_s27 = smov 112  }
  0x39   :  { %v61_v6 = vld [vmem:[#allocation5] sm:$0xff]  ;;  %v1216_v8 = vpack.c.bf16 %v154_v5, %v153_v3  ;;  %v66_v10 = vld [vmem:[#allocation5 + $0x28] sm:$0xff]  ;;  %v68_v11 = vld [vmem:[#allocation5 + $0x38] sm:$0xff]  ;;  %s1452_s28 = smov 104   ;;  %v233_v53 = vshrl.u32 %v232_v52, 7  ;;  %v236_v55 = vand.u32 127, %v232_v52 }
  0x3a   :  { %v1210_v9 = vpack.c.bf16 %v63_v7, %v61_v6  ;;  %v155_v12 = vld [vmem:[#allocation7 + $0x10] sm:$0xff]  ;;  %1209 = vmatprep.subr.bf16.mxu0 %v1208_v4  ;;  %v1212_v13 = vpack.c.bf16 %v68_v11, %v66_v10  ;;  %v156_v14 = vld [vmem:[#allocation7 + $0x18] sm:$0xff]  ;;  %v65_v15 = vld [vmem:[#allocation5 + $0x20] sm:$0xff]  ;;  %v1453_v58 = vmov -1e+30   ;;  %vm336_vm9 = vcmask 130048  }
  0x3b   :  { %v67_v16 = vld [vmem:[#allocation5 + $0x30] sm:$0xff]  ;;  %1217 = vmatprep.subr.bf16.mxu1 %v1216_v8  ;;  %v1220_v17 = vpack.c.bf16 %v156_v14, %v155_v12  ;;  %v60_v20 = vld [vmem:[#allocation2 + $0x8] sm:$0xff]  ;;  %vm1531_vm2 = vmpackc.low %vm248_vm1, %vm248_vm1  ;;  %v234_v54 = vadd.s32 8, %v233_v53  ;;  %v237_v57 = vxor.u32 %v236_v55, %v233_v53  ;;  %vm241_vm6 = vcmp.le.s32.totalorder %v236_v55, %v233_v53  ;;  %s1454_s29 = smov 96   ;;  %s1455_s30 = smov 64  }
  0x3c   :  { %1211 = vmatpush1.bf16.msra.mxu0 %v1210_v9  ;;  %v1214_v18 = vpack.c.bf16 %v67_v16, %v65_v15  ;;  %v59_v19 = vld [vmem:[#allocation2] sm:$0xff]  ;;  %1219 = vmatpush3.bf16.msra.mxu1 %v1216_v8  ;;  %s1456_s5 = smov 32   ;;  %s1457_s8 = smov [#allocation8]  }
  0x3d   :  { %1213 = vmatprep.subr.bf16.mxu0 %v1212_v13  ;;  %1221 = vmatprep.subr.bf16.mxu1 %v1220_v17  ;;  %v238_v56 = vxor.u32 %v236_v55, %v234_v54  ;;  %vm242_vm4 = vcmp.le.s32.totalorder %v236_v55, %v234_v54  ;;  %vm239_vm5 = vcmp.lt.s32.totalorder %v237_v57, 8  ;;  %s1061_s9 = sshll.u32 %s1457_s8, 4  ;;  %s1062_s9 = int_to_ptr.vmem [resolvable:$true] %s1061_s9 }
  0x3e   :  { %1149 = vmatprep.mubr.msk.f32.mxu1 %vm69_vm0, %v59_v19  ;;  %vm243_vm8 = vmand %vm239_vm5, %vm241_vm6  ;;  %s1414_s10 = scalar_lea.vmem %s1062_s9, 256  ;;  %p1419_p11 = scmp.lt.s32.totalorder %s1062_s9, %s1062_s9 }
  0x3f   :  { %vm240_vm3 = vcmp.lt.s32.totalorder %v238_v56, 8  ;;  %v245_v60 = vsel %vm243_vm8, 0.0, %v1453_v58  ;;  %p1415_p10 = scmp.ne.s32.totalorder %s1062_s9, %s1414_s10  ;;  %p1420_p12 = scmp.lt.s32.totalorder %s1414_s10, %s1414_s10 }
  0x40   :  { %1215 = vmatpush1.bf16.msra.mxu0 %v1214_v18  ;;  %1223 = vmatpush3.bf16.msra.mxu1 %v1220_v17  ;;  %vm244_vm7 = vmand %vm240_vm3, %vm242_vm4 }
  0x41   :  { %v246_v59 = vsel %vm244_vm7, 0.0, %v1453_v58  ;;  %p1421_p13 = por %p1420_p12, %p1419_p11 }
  0x43   :  { %1074 = vmatmul.mubr.msk.f32.vlgmr.msra.gmra.mrb[0].mxu0 %vm69_vm0, %v59_v19  ;;  %1150 = vmatmul.mubr.msk.f32.vlgmr.msra.gmra.mrb[0].mxu1 %vm69_vm0, %v60_v20  ;;  %p1422_p0 = pnand %p1421_p13, %p1415_p10 }
  0x44   :  { %146 = vmatprep.mubr.f32.mxu0 %v1449_v0 }
  0x47   :  { %1075 = vmatmul.mubr.msk.f32.gmra.mrb[2].mxu0 %vm69_vm0, %v60_v20 }
 0x116   :  { %v142_v21 = vpop.f32.mrb[0].mxu0  ;;  %v1151_v22 = vpop.f32.mrb[0].mxu1 }
 0x117   :  { %v144_v23 = vpop.f32.mrb[1].mxu0  ;;  %v223_v24 = vpop.f32.mrb[1].mxu1 }
 0x118   :  { %1156 = vmatprep.mubr.msk.f32.mxu0 %vm248_vm1, %v144_v23  ;;  %v1224_v26 = vpack.c.bf16 %v1151_v22, %v223_v24  ;;  %v1286_v27 = vpack.i.bf16 %v1151_v22, %v223_v24 }
 0x11a   :  { %v148_v28 = vpop.f32.mrb[2].mxu0  ;;  %1287 = vrot.lane.b32.xlu0 %v1286_v27, %s1450_s2  ;;  %1226 = vmatprep.subr.msk.bf16.mxu0 %vm1531_vm2, %v1224_v26 }
 0x11b   :  { %v150_v29 = vpop.f32.mrb[3].mxu0  ;;  %v1538_v30 = vpack.i.bf16 %v148_v28, %v142_v21  ;;  %1229 = vmatpush3.bf16.xpose.msk.msra.mxu0 %vm1531_vm2, %v1224_v26  ;;  %v1542_v31 = vpack.c.bf16 %v148_v28, %v142_v21 }
 0x11c   :  { %361 = vrot.lane.b32.xlu1 %v150_v29, %s1450_s2 }
 0x11e   :  { %359 = vrot.lane.b32.xlu0 %v144_v23, %s1450_s2 }
 0x120   :  { %1292 = vrot.lane.b32.xlu1 %v1286_v27, %s1451_s27 }
 0x122   :  { %1297 = vrot.lane.b32.xlu0 %v1286_v27, %s1452_s28  ;;  %1157 = vmatmul.mubr.msk.f32.vlgmr.msra.gmra.mrb[4].mxu0 %vm248_vm1, %v150_v29 }
 0x124   :  { %642 = vrot.lane.b32.xlu1 %v144_v23, %s1451_s27 }
 0x126   :  { %644 = vrot.lane.b32.xlu0 %v150_v29, %s1451_s27 }
 0x128   :  { %844 = vrot.lane.b32.xlu1 %v144_v23, %s1452_s28 }
 0x12a   :  { %846 = vrot.lane.b32.xlu0 %v150_v29, %s1452_s28 }
 0x18c   :  { %v1288_v32 = vpop.permute.xlu0 %1287 }
 0x18d   :  { %v1290_v33 = vunpack.i.h.bf16 %v1288_v32  ;;  %v1289_v34 = vunpack.i.l.bf16 %v1288_v32 }
 0x18e   :  { %v362_v35 = vpop.permute.xlu1 %361 }
 0x18f   :  { %v1230_v36 = vpack.c.bf16 %v1290_v33, %v1289_v34 }
 0x190   :  { %v360_v37 = vpop.permute.xlu0 %359 }
 0x191   :  { %1232 = vmatprep.subr.msk.bf16.mxu1 %vm1531_vm2, %v1230_v36  ;;  %1163 = vmatprep.mubr.msk.f32.mxu1 %vm248_vm1, %v360_v37 }
 0x192   :  { %v1293_v38 = vpop.permute.xlu1 %1292  ;;  %1235 = vmatpush3.bf16.xpose.msk.msra.mxu1 %vm1531_vm2, %v1230_v36 }
 0x193   :  { %v1295_v39 = vunpack.i.h.bf16 %v1293_v38  ;;  %v1294_v40 = vunpack.i.l.bf16 %v1293_v38 }
 0x194   :  { %v1298_v42 = vpop.permute.xlu0 %1297 }
 0x195   :  { %v1244_v41 = vpack.c.bf16 %v1295_v39, %v1294_v40  ;;  %v1300_v43 = vunpack.i.h.bf16 %v1298_v42  ;;  %v1299_v44 = vunpack.i.l.bf16 %v1298_v42 }
 0x196   :  { %v643_v46 = vpop.permute.xlu1 %642 }
 0x197   :  { %1246 = vmatprep.subr.msk.bf16.mxu1 %vm1531_vm2, %v1244_v41  ;;  %v1254_v45 = vpack.c.bf16 %v1300_v43, %v1299_v44 }
 0x198   :  { %v645_v47 = vpop.permute.xlu0 %644 }
 0x199   :  { %1164 = vmatmul.mubr.msk.f32.vlgmr.msra.gmra.mrb[2].mxu1 %vm248_vm1, %v362_v35 }
 0x19a   :  { %1184 = vmatprep.mubr.msk.f32.mxu1 %vm248_vm1, %v643_v46  ;;  %1249 = vmatpush3.bf16.xpose.msk.msra.mxu1 %vm1531_vm2, %v1244_v41  ;;  %v845_v48 = vpop.permute.xlu1 %844 }
 0x19b   :  { %1256 = vmatprep.subr.msk.bf16.mxu1 %vm1531_vm2, %v1254_v45 }
 0x19c   :  { %v847_v49 = vpop.permute.xlu0 %846 }
 0x1a1   :  { %1185 = vmatmul.mubr.msk.f32.vlgmr.msra.gmra.mrb[4].mxu1 %vm248_vm1, %v645_v47 }
 0x1a2   :  { %1259 = vmatpush3.bf16.xpose.msk.msra.mxu1 %vm1531_vm2, %v1254_v45  ;;  %1198 = vmatprep.mubr.msk.f32.mxu1 %vm248_vm1, %v845_v48 }
 0x1a9   :  { %1199 = vmatmul.mubr.msk.f32.vlgmr.msra.gmra.mrb[6].mxu1 %vm248_vm1, %v847_v49 }
 0x1f5   :  { %v1158_v50 = vpop.f32.mrb[4].mxu0 }
 0x1f6   :  { %v327_v51 = vpop.f32.mrb[5].mxu0  ;;  %v333_v3 = vadd.f32 %v1158_v50, %v246_v59 }
 0x1f7   :  { %v328_v1 = vadd.f32 %v327_v51, %v245_v60 }
 0x1f8   :  { %v340_v7 = vsel %vm336_vm9, %v333_v3, -inf }
 0x1f9   :  { %v337_v5 = vsel %vm336_vm9, %v328_v1, -inf }
 0x26c   :  { %v1165_v61 = vpop.f32.mrb[2].mxu1 }
 0x26d   :  { %v447_v62 = vadd.f32 %v1165_v61, %v246_v59  ;;  %v441_v63 = vpop.f32.mrb[3].mxu1 }
 0x26e   :  { %v442_v0 = vadd.f32 %v441_v63, %v245_v60 }
 0x26f   :  { %v453_v2 = vsel %vm336_vm9, %v447_v62, -inf }
 0x270   :  { %454 = vmax.xlane.f32.xlu0 %v453_v2  ;;  %v450_v4 = vsel %vm336_vm9, %v442_v0, -inf }
 0x271   :  { %451 = vmax.xlane.f32.xlu1 %v450_v4 }
 0x274   :  { %v1186_v6 = vpop.f32.mrb[4].mxu1  ;;  %338 = vmax.xlane.f32.xlu0 %v337_v5 }
 0x275   :  { %v730_v8 = vadd.f32 %v1186_v6, %v246_v59  ;;  %v724_v9 = vpop.f32.mrb[5].mxu1  ;;  %341 = vmax.xlane.f32.xlu1 %v340_v7 }
 0x276   :  { %v1567_v10 = vadd.f32 %v724_v9, %v245_v60 }
 0x277   :  { %v736_v11 = vsel %vm336_vm9, %v730_v8, -inf }
 0x278   :  { %v733_v12 = vsel %vm336_vm9, %v1567_v10, -inf }
 0x279   :  { %737 = vmax.xlane.f32.xlu1 %v736_v11  ;;  %734 = vmax.xlane.f32.xlu0 %v733_v12 }
 0x27c   :  { %v1200_v13 = vpop.f32.mrb[6].mxu1 }
 0x27d   :  { %v932_v14 = vadd.f32 %v1200_v13, %v246_v59  ;;  %v926_v15 = vpop.f32.mrb[7].mxu1 }
 0x27e   :  { %v927_v16 = vadd.f32 %v926_v15, %v245_v60 }
 0x27f   :  { %v938_v17 = vsel %vm336_vm9, %v932_v14, -inf }
 0x280   :  { %939 = vmax.xlane.f32.xlu1 %v938_v17  ;;  %v935_v18 = vsel %vm336_vm9, %v927_v16, -inf }
 0x281   :  { %936 = vmax.xlane.f32.xlu0 %v935_v18 }
 0x2fd   :  { %v455_v19 = vpop.xlane.xlu0 %454 }
 0x2fe   :  { %v452_v20 = vpop.xlane.xlu1 %451  ;;  %v457_v22 = vsub.f32 %v447_v62, %v455_v19 }
 0x2ff   :  { %v456_v21 = vsub.f32 %v442_v0, %v452_v20 }
 0x300   :  { %v460_v29 = vmul.f32 1.442695, %v457_v22 }
 0x301   :  { %v339_v23 = vpop.xlane.xlu0 %338  ;;  %v458_v27 = vmul.f32 1.442695, %v456_v21 }
 0x302   :  { %v343_v24 = vsub.f32 %v328_v1, %v339_v23  ;;  %v342_v25 = vpop.xlane.xlu1 %341 }
 0x303   :  { %v344_v26 = vsub.f32 %v333_v3, %v342_v25 }
 0x304   :  { %v345_v28 = vmul.f32 1.442695, %v343_v24 }
 0x305   :  { %v347_v32 = vmul.f32 1.442695, %v344_v26 }
 0x306   :  { %1316 = vpow2.f32 %v345_v28  ;;  %v738_v33 = vpop.xlane.xlu1 %737  ;;  %v735_v36 = vpop.xlane.xlu0 %734 }
 0x307   :  { %1318 = vpow2.f32 %v347_v32  ;;  %v740_v34 = vsub.f32 %v730_v8, %v738_v33  ;;  %v739_v57 = vsub.f32 %v1567_v10, %v735_v36  ;;  %v1102_v33 = vld [vmem:[%s1635_s3] ss:$0 sm:$0xff] }
 0x308   :  { %1320 = vpow2.f32 %v458_v27 }
 0x309   :  { %1322 = vpow2.f32 %v460_v29  ;;  %v743_v35 = vmul.f32 1.442695, %v740_v34  ;;  %v741_v58 = vmul.f32 1.442695, %v739_v57 }
 0x30b   :  { %1324 = vpow2.f32 %v743_v35 }
 0x30d   :  { %v940_v37 = vpop.xlane.xlu1 %939 }
 0x30e   :  { %v942_v38 = vsub.f32 %v932_v14, %v940_v37  ;;  %v937_v39 = vpop.xlane.xlu0 %936 }
 0x30f   :  { %v941_v40 = vsub.f32 %v927_v16, %v937_v39 }
 0x310   :  { %v1317_v41 = vpop.eup %1316  ;;  %v945_v42 = vmul.f32 1.442695, %v942_v38 }
 0x311   :  { %v1574_v43 = vpop.eup %1318  ;;  %v943_v44 = vmul.f32 1.442695, %v941_v40  ;;  %v349_v45 = vsel %vm336_vm9, %v1317_v41, 0.0 }
 0x312   :  { %v1321_v46 = vpop.eup %1320  ;;  %1326 = vpow2.f32 %v945_v42  ;;  %350 = vadd.xlane.f32.xlu0 %v349_v45  ;;  %v352_v47 = vsel %vm336_vm9, %v1574_v43, 0.0 }
 0x313   :  { %v1323_v48 = vpop.eup %1322  ;;  %353 = vadd.xlane.f32.xlu1 %v352_v47  ;;  %1328 = vpow2.f32 %v943_v44  ;;  %v462_v49 = vsel %vm336_vm9, %v1321_v46, 0.0 }
 0x314   :  { %v465_v50 = vsel %vm336_vm9, %v1323_v48, 0.0  ;;  %1330 = vpow2.f32 %v741_v58 }
 0x315   :  { %v1581_v51 = vpop.eup %1324 }
 0x316   :  { %463 = vadd.xlane.f32.xlu0 %v462_v49  ;;  %v748_v52 = vsel %vm336_vm9, %v1581_v51, 0.0 }
 0x317   :  { %466 = vadd.xlane.f32.xlu1 %v465_v50 }
 0x31b   :  { %749 = vadd.xlane.f32.xlu1 %v748_v52 }
 0x31c   :  { %v1585_v53 = vpop.eup %1326 }
 0x31d   :  { %v950_v54 = vsel %vm336_vm9, %v1585_v53, 0.0  ;;  %v1589_v55 = vpop.eup %1328 }
 0x31e   :  { %v947_v56 = vsel %vm336_vm9, %v1589_v55, 0.0  ;;  %v1331_v59 = vpop.eup %1330 }
 0x31f   :  { %951 = vadd.xlane.f32.xlu1 %v950_v54  ;;  %v745_v60 = vsel %vm336_vm9, %v1331_v59, 0.0 }
 0x323   :  { %948 = vadd.xlane.f32.xlu1 %v947_v56 }
 0x32c   :  { %1302 = vrot.lane.b32.xlu0 %v1538_v30, %s1454_s29 }
 0x334   :  { %1307 = vrot.lane.b32.xlu1 %v1538_v30, %s1455_s30 }
 0x34b   :  { %746 = vadd.xlane.f32.xlu0 %v745_v60 }
 0x361   :  { %1312 = vrot.lane.b32.xlu0 %v1538_v30, %s1456_s5 }
 0x39f   :  { %v351_v61 = vpop.xlane.xlu0 %350 }
 0x3a0   :  { %v354_v62 = vpop.xlane.xlu1 %353  ;;  %1332 = vrcp.f32 %v351_v61 }
 0x3a3   :  { %v464_v63 = vpop.xlane.xlu0 %463 }
 0x3a4   :  { %1334 = vrcp.f32 %v464_v63  ;;  %v467_v0 = vpop.xlane.xlu1 %466 }
 0x3a5   :  { %1336 = vrcp.f32 %v467_v0 }
 0x3a6   :  { %1338 = vrcp.f32 %v354_v62 }
 0x3a7   :  { %v1303_v1 = vpop.permute.xlu0 %1302 }
 0x3a8   :  { %v1305_v2 = vunpack.i.h.bf16 %v1303_v1  ;;  %v1304_v3 = vunpack.i.l.bf16 %v1303_v1  ;;  %v750_v4 = vpop.xlane.xlu1 %749 }
 0x3a9   :  { %1340 = vrcp.f32 %v750_v4 }
 0x3aa   :  { %v1236_v5 = vpack.c.bf16 %v1305_v2, %v1304_v3  ;;  %v1333_v7 = vpop.eup %1332 }
 0x3ab   :  { %v357_v12 = vmul.f32 %v1333_v7, %v1317_v41 }
 0x3ac   :  { %v952_v6 = vpop.xlane.xlu1 %951  ;;  %1237 = vmatprep.subr.bf16.mxu0 %v1236_v5 }
 0x3ad   :  { %1239 = vmatpush3.bf16.msra.mxu0 %v1236_v5 }
 0x3ae   :  { %v1335_v8 = vpop.eup %1334  ;;  %1241 = vmatprep.subr.bf16.mxu0 %v1542_v31 }
 0x3af   :  { %v1337_v30 = vpop.eup %1336  ;;  %v470_v9 = vmul.f32 %v1335_v8, %v1321_v46 }
 0x3b0   :  { %v471_v10 = vmul.f32 %v1337_v30, %v1323_v48  ;;  %v949_v11 = vpop.xlane.xlu1 %948  ;;  %v1339_v14 = vpop.eup %1338 }
 0x3b1   :  { %1170 = vmatprep.mubr.msk.f32.mxu0 %vm336_vm9, %v470_v9  ;;  %v358_v18 = vmul.f32 %v1339_v14, %v1574_v43  ;;  %1342 = vrcp.f32 %v949_v11 }
 0x3b2   :  { %1171 = vmatmul.mubr.msk.f32.vlgmr.msra.gmra.mrb[6].mxu0 %vm336_vm9, %v471_v10 }
 0x3b3   :  { %1243 = vmatpush3.bf16.msra.mxu0 %v1542_v31  ;;  %1177 = vmatprep.mubr.msk.f32.mxu0 %vm336_vm9, %v357_v12  ;;  %v1341_v23 = vpop.eup %1340 }
 0x3b4   :  { %v1308_v13 = vpop.permute.xlu1 %1307  ;;  %v754_v27 = vmul.f32 %v1341_v23, %v1581_v51 }
 0x3b5   :  { %v1310_v15 = vunpack.i.h.bf16 %v1308_v13  ;;  %v1309_v16 = vunpack.i.l.bf16 %v1308_v13 }
 0x3b7   :  { %v1250_v17 = vpack.c.bf16 %v1310_v15, %v1309_v16 }
 0x3b9   :  { %1251 = vmatprep.subr.bf16.mxu0 %v1250_v17 }
 0x3ba   :  { %1178 = vmatmul.mubr.msk.f32.vlgmr.msra.gmra.mrb[6].mxu0 %vm336_vm9, %v358_v18 }
 0x3bb   :  { %1253 = vmatpush3.bf16.msra.mxu0 %v1250_v17  ;;  %v1343_v24 = vpop.eup %1342 }
 0x3bc   :  { %v955_v28 = vmul.f32 %v1343_v24, %v1589_v55 }
 0x3d8   :  { %v747_v19 = vpop.xlane.xlu0 %746 }
 0x3d9   :  { %1344 = vrcp.f32 %v747_v19 }
 0x3da   :  { %1346 = vrcp.f32 %v952_v6 }
 0x3dc   :  { %v1313_v20 = vpop.permute.xlu0 %1312 }
 0x3dd   :  { %v1315_v21 = vunpack.i.h.bf16 %v1313_v20  ;;  %v1314_v31 = vunpack.i.l.bf16 %v1313_v20 }
 0x3df   :  { %v1260_v22 = vpack.c.bf16 %v1315_v21, %v1314_v31 }
 0x3e1   :  { %1261 = vmatprep.subr.bf16.mxu0 %v1260_v22 }
 0x3e3   :  { %v1345_v25 = vpop.eup %1344 }
 0x3e4   :  { %v753_v26 = vmul.f32 %v1345_v25, %v1331_v59  ;;  %v1347_v29 = vpop.eup %1346 }
 0x3e5   :  { %v956_v32 = vmul.f32 %v1347_v29, %v1585_v53 }
 0x3e6   :  { %1191 = vmatprep.mubr.msk.f32.mxu0 %vm336_vm9, %v753_v26 }
 0x3e7   :  { %1192 = vmatmul.mubr.msk.f32.vlgmr.msra.gmra.mrb[6].mxu0 %vm336_vm9, %v754_v27 }
 0x3e8   :  { %1263 = vmatpush3.bf16.msra.mxu0 %v1260_v22  ;;  %1205 = vmatprep.mubr.msk.f32.mxu0 %vm336_vm9, %v955_v28 }
 0x3ef   :  { %1206 = vmatmul.mubr.msk.f32.vlgmr.msra.gmra.mrb[6].mxu0 %vm336_vm9, %v956_v32 }
 0x4c2   :  { %v1207_v34 = vpop.f32.mrb[6].mxu0 }
 0x4c3   :  { %v1053_v35 = vadd.f32 %v1207_v34, %v1102_v33  ;;  %v1035_v36 = vpop.f32.mrb[7].mxu0 }
 0x4c4   :  { %v1052_v37 = vadd.f32 %v1102_v33, %v1035_v36 }
 0x4c5   :  { %1055 = vst.msk [vmem:[#allocation8 + $0x8] sm:$0xff] %vm69_vm0, %v1053_v35 }
 0x4c6   :  { %1054 = vst.msk [vmem:[#allocation8] sm:$0xff] %vm69_vm0, %v1052_v37 }
 0x4c7   :  { %1425 = shalt.err (!%p1422_p0)
}
 0x4c8   :  { %s1426_s12 = scalar_lea.hbm %s1636_s4, 256 }
 0x4c9   :  { %p1427_p1 = scmp.ne.s32.totalorder %s1636_s4, %s1426_s12  ;;  %p1430_p2 = scmp.lt.u32.totalorder %s1426_s12, %s1636_s4 }
 0x4cb   :  { %p1432_p3 = pnand %p1430_p2, %p1427_p1 }
 0x4cd   :  { %1435 = shalt.err (!%p1432_p3)
}
 0x4ce   :  { %1067 = dma.vmem_to_hbm [thread:$0]  %s1062_s9, 256, %s1636_s4, [#allocation4], %s1446_s1, %s1446_s1, %s1447_s13  }
 0x4cf   :  { %1440 = dma.done.wait [#allocation4], 256  }
 0x4d0   :  { %1441 = vsyncadd [#allocation4], 4294967040 }
 0x4d1   :  { %1071 = vsyncpa [#allocation3], 1 }
 0x4d2   :  { %1072 = vsyncpa [#allocation6], 1 }
 0x4d3   :  { %1073 = vsyncpa [#allocation4], 1 }

</bundles_post_ra>
